<compile_context>
chip_gen: v7x
topology: tpu7x:2x2x1
jax: 0.10.0
libtpu: 0.0.40
codegen_flags: <defaults>
</compile_context>

<pallas_src>
import jax
import jax.numpy as jnp
from jax.experimental import pallas as pl
from jax.experimental.pallas import tpu as pltpu

_LANE = 128                      # vreg lane width: full-width unmasked stores
_TILE_BYTES = 4 * 1024 * 1024    # ~4 MiB of *input* per grid step
_VMEM_LIMIT = 32 * 1024 * 1024   # 2 bufs x (in + out) x 4 MiB = 16 MiB < 32 MiB


def _round_up(x, m):
    return ((x + m - 1) // m) * m


def _h_swish_kernel(x_ref, o_ref):
    x = x_ref[...]
    xf = x.astype(jnp.float32)                                # exact for f32; upcast bf16
    relu6 = jnp.minimum(jnp.maximum(xf + 3.0, 0.0), 6.0)      # h_sigmoid numerator
    o_ref[...] = (xf * relu6 * (1.0 / 6.0)).astype(o_ref.dtype)


def h_swish(x):
    """Elementwise x * ReLU6(x + 3) / 6 for floating dtypes, via one Pallas call."""
    orig_shape = x.shape
    dtype = x.dtype
    if not jnp.issubdtype(dtype, jnp.floating):
        raise TypeError(f"h_swish expects a floating dtype, got {dtype}")
    total = x.size
    if total == 0:
        return x

    itemsize = jnp.dtype(dtype).itemsize
    # Sublane packing: 8 rows per vreg for 4-byte, 16 for 2-byte, 32 for 1-byte.
    sublane = max(8, 32 // itemsize)

    rows = pl.cdiv(total, _LANE)
    padded_rows = _round_up(rows, sublane)          # minimal (dtype-aware) row padding
    padded_total = padded_rows * _LANE

    # Biggest tile that (a) is ~_TILE_BYTES of input, (b) is sublane-aligned,
    # (c) leaves at least 2 grid steps so v7x's two TensorCores both get work.
    max_tile_rows = max(sublane,
                        (_TILE_BYTES // (_LANE * itemsize)) // sublane * sublane)
    half_rows = _round_up(pl.cdiv(padded_rows, 2), sublane)
    tile_rows = max(sublane, min(max_tile_rows, half_rows))
    grid = pl.cdiv(padded_rows, tile_rows)          # ragged last block is masked by Pallas

    flat = x.reshape(-1)
    if padded_total != total:
        # < sublane extra rows (<= 16 KiB); h_swish(0) == 0 and the pad is sliced off.
        flat = jnp.pad(flat, (0, padded_total - total))
    x2 = flat.reshape(padded_rows, _LANE)           # lane-dense slab

    out = pl.pallas_call(
        _h_swish_kernel,
        grid=(grid,),
        in_specs=[pl.BlockSpec((tile_rows, _LANE), lambda i: (i, 0))],
        out_specs=pl.BlockSpec((tile_rows, _LANE), lambda i: (i, 0)),
        out_shape=jax.ShapeDtypeStruct((padded_rows, _LANE), dtype),
        compiler_params=pltpu.CompilerParams(
            dimension_semantics=("parallel",),
            vmem_limit_bytes=_VMEM_LIMIT,
            allow_input_fusion=[True],              # let XLA fuse the pad/reshape in
        ),
        cost_estimate=pl.CostEstimate(
            flops=4 * total,
            transcendentals=0,
            bytes_accessed=2 * total * itemsize),
    )(x2)

    if padded_total != total:
        return out.reshape(-1)[:total].reshape(orig_shape)
    return out.reshape(orig_shape)


if __name__ == "__main__":
    key = jax.random.PRNGKey(0)

    # NCHW shape matching the module's typical use.
    x = jax.random.normal(key, (2, 4, 16, 16), jnp.float32)
    y = jax.block_until_ready(jax.jit(h_swish)(x))
    ref = x * jnp.clip(x + 3.0, 0.0, 6.0) / 6.0
    assert y.shape == x.shape and y.dtype == x.dtype
    assert bool(jnp.all(jnp.isfinite(y)))
    assert bool(jnp.allclose(y, ref, atol=1e-6, rtol=1e-6))

    # Misaligned shape exercises the minimal-pad / slice path.
    x2 = jax.random.normal(jax.random.PRNGKey(1), (3, 5, 7), jnp.float32)
    y2 = jax.block_until_ready(jax.jit(h_swish)(x2))
    ref2 = x2 * jnp.clip(x2 + 3.0, 0.0, 6.0) / 6.0
    assert bool(jnp.allclose(y2, ref2, atol=1e-6, rtol=1e-6))

    # bf16 path exercises dtype-aware sublane rounding and f32-internal math.
    x3 = jax.random.normal(jax.random.PRNGKey(2), (2, 4, 16, 16), jnp.bfloat16)
    y3 = jax.block_until_ready(jax.jit(h_swish)(x3))
    x3f = x3.astype(jnp.float32)
    ref3 = x3f * jnp.clip(x3f + 3.0, 0.0, 6.0) / 6.0
    assert y3.dtype == jnp.bfloat16
    assert bool(jnp.allclose(y3.astype(jnp.float32), ref3, atol=1e-2, rtol=1e-2))

    print("KERNEL_OK")
</pallas_src>

<mosaic_0001>
module attributes {stable_mosaic.version = 11 : i64} {
  func.func @_h_swish_kernel(%arg0: i32, %arg1: memref<8x128xf32, #tpu.memory_space<vmem>>, %arg2: memref<8x128xf32, #tpu.memory_space<vmem>>) attributes {dimension_semantics = [#tpu.dimension_semantics<parallel>], iteration_bounds = array<i64: 2>, scalar_prefetch = 0 : i64, scratch_operands = 0 : i64, tpu.core_type = #tpu.core_type<tc>, window_params = [{transform_indices = @transform_0, window_bounds = array<i64: 8, 128>}, {transform_indices = @transform_1, window_bounds = array<i64: 8, 128>}]} {
    %c0 = arith.constant 0 : index
    %c0_0 = arith.constant 0 : index
    %0 = vector.load %arg1[%c0, %c0_0] : memref<8x128xf32, #tpu.memory_space<vmem>>, vector<8x128xf32>
    %cst = arith.constant 3.000000e+00 : f32
    %1 = vector.broadcast %cst : f32 to vector<8x128xf32>
    %2 = arith.addf %0, %1 : vector<8x128xf32>
    %cst_1 = arith.constant 0.000000e+00 : f32
    %3 = vector.broadcast %cst_1 : f32 to vector<8x128xf32>
    %4 = arith.maximumf %2, %3 : vector<8x128xf32>
    %cst_2 = arith.constant 6.000000e+00 : f32
    %5 = vector.broadcast %cst_2 : f32 to vector<8x128xf32>
    %6 = arith.minimumf %4, %5 : vector<8x128xf32>
    %7 = arith.mulf %0, %6 : vector<8x128xf32>
    %cst_3 = arith.constant 0.166666672 : f32
    %8 = vector.broadcast %cst_3 : f32 to vector<8x128xf32>
    %9 = arith.mulf %7, %8 : vector<8x128xf32>
    %c0_4 = arith.constant 0 : index
    %c0_5 = arith.constant 0 : index
    %10 = vector.load %arg2[%c0_4, %c0_5] : memref<8x128xf32, #tpu.memory_space<vmem>>, vector<8x128xf32>
    tpu.vector_store %arg2[%c0_4, %c0_5], %9 {strides = array<i32>} : memref<8x128xf32, #tpu.memory_space<vmem>>, vector<8x128xf32>,
    return
  }
  func.func @transform_0(%arg0: i32) -> (i32, i32) {
    %c0_i32 = arith.constant 0 : i32
    %c0_i32_0 = arith.constant 0 : i32
    return %arg0, %c0_i32 : i32, i32
  }
  func.func @transform_1(%arg0: i32) -> (i32, i32) {
    %c0_i32 = arith.constant 0 : i32
    %c0_i32_0 = arith.constant 0 : i32
    return %arg0, %c0_i32 : i32, i32
  }
}

</mosaic_0001>

<bundles_post_ra>
// kernel: h_swish.1
= control target key start
LH: loop header
LB: loop body
LE: loop exit
PB: predicated region body
PF: predicated region fallthrough
CT: control target
= control target key end

     0   :  { %s193_s6 = smov 0   ;;  %s213_s0 = inlined_call_operand.vmem [shape: f32[16,128], index: 0, kind: input, shape index: {}]   ;;  %s214_s1 = inlined_call_operand.vmem [shape: f32[16,128], index: 1, kind: output, shape index: {}]  }
   0x1 LB: > { %s172_s7 = sadd.s32 4294967295, %s195_s6   ;;  %p176_p0 = scmp.ge.s32.totalorder %s195_s6, 1  ;;  %s195_s6 = sphi %s193_s6, %s11_s6  }
   0x2   : > { %p86_p1 = scmp.lt.s32.totalorder %s195_s6, 3 }
   0x4   : > { %p87_p2 = pnand %p176_p0, %p86_p1 }
   0x5   : > { %p104_p3 = scmp.lt.s32.totalorder (!%p87_p2), %s172_s7, 1 }
   0x6   : > { %90 = sbr.rel (%p87_p2) target bundleno = 28 (0x1c), region = 24 }
   0xd   : > { %s216_s7 = smov (!%p104_p3, %s172_s7), 1 }
   0xe   : > { %s177_s8 = sshll.u32 %s216_s7, 3 }
   0xf   : > { %s107_s11 = scalar_lea.vmem %s213_s0, %s177_s8  ;;  %s111_s14 = scalar_lea.vmem %s214_s1, %s177_s8 }
  0x10   : > { %v112_v0 = vld [vmem:[%s107_s11] sm:$0xff] }
  0x11   : > { %v113_v1 = vadd.f32 3.0, %v112_v0 }
  0x13   : > { %v114_v2 = vmax.f32 %v113_v1, 0.0 }
  0x15   : > { %v115_v3 = vmin.f32 %v114_v2, 6.0 }
  0x17   : > { %v116_v4 = vmul.f32 %v115_v3, %v112_v0 }
  0x19   : > { %v117_v5 = vmul.f32 0.16666667, %v116_v4 }
  0x1b   : > { %118 = vst [vmem:[%s111_s14] sm:$0xff] %v117_v5 }
  0x1c PF: > { %s11_s6 = sadd.s32 1, %s195_s6  }
  0x1d   : > { %p8_p4 = scmp.ge.s32.totalorder %s11_s6, 4  }
  0x1f   :  { %10 = sbr.rel (!%p8_p4) target bundleno = 1 (0x1), region = 54 }

</bundles_post_ra>
